<compile_context>
chip_gen: v7x
topology: tpu7x:2x2x1
jax: 0.10.0
libtpu: 0.0.40
codegen_flags: <defaults>
</compile_context>

<pallas_src>
import functools

import jax
import jax.numpy as jnp
from jax.experimental import pallas as pl
from jax.experimental.pallas import tpu as pltpu

BN_EPS = 1e-5
LANE = 128
_MiB = 1024 * 1024
# Resident weights + double-buffered streams kept comfortably under the
# smallest per-core VMEM (v7x: 64 MiB physical / 32 MiB scoped default).
_VMEM_BUDGET = 24 * _MiB


def _round_up(n, m):
    return ((n + m - 1) // m) * m


def _pad_cast(a, shape, dtype):
    """Cast + zero-pad to `shape`; skip the pad copy when already aligned."""
    a = a.astype(dtype)
    if a.shape == shape:
        return a
    return jnp.zeros(shape, dtype).at[: a.shape[0], : a.shape[1]].set(a)


def _vmem_needed(tile_b, in_p, h_p, p_p):
    # Pass 1: resident w1 (bf16) + b1 (f32); double-buffered x-in (bf16),
    # h-out (bf16), sum/sumsq-out (f32).
    k1 = (2 * in_p * h_p + 4 * h_p
          + 2 * (2 * tile_b * in_p + 2 * tile_b * h_p + 2 * 4 * h_p))
    # Pass 2: resident w2 (bf16) + [1,H]/[1,P] f32 vectors; double-buffered
    # h-in (bf16), out (f32).
    k2 = (2 * h_p * p_p + 4 * (4 * h_p + p_p)
          + 2 * (2 * tile_b * h_p + 4 * tile_b * p_p))
    return max(k1, k2)


def _fc1_stats_kernel(x_ref, w1_ref, b1_ref, h_ref, sum_ref, sumsq_ref,
                      *, pad_rows):
    i = pl.program_id(0)

    @pl.when(i == 0)
    def _init():
        sum_ref[...] = jnp.zeros_like(sum_ref)
        sumsq_ref[...] = jnp.zeros_like(sumsq_ref)

    # fc1 on the MXU: bf16 operands, f32 accumulation; bias add in f32.
    h = jnp.dot(x_ref[...], w1_ref[...],
                preferred_element_type=jnp.float32) + b1_ref[...]

    # Global BN batch statistics: accumulator outputs have a constant block
    # index, so they stay resident in VMEM across all batch tiles.
    sum_ref[...] += jnp.sum(h, axis=0, keepdims=True)
    sumsq_ref[...] += jnp.sum(h * h, axis=0, keepdims=True)

    h_ref[...] = h.astype(h_ref.dtype)

    if pad_rows:  # static python int -> branch resolved at trace time
        @pl.when(i == pl.num_programs(0) - 1)
        def _correct_padding():
            # Padded x rows are zero, so each contributes exactly b1 / b1^2 to
            # the sums; remove them once here instead of masking every tile.
            corr = jnp.float32(pad_rows)
            b1 = b1_ref[...]
            sum_ref[...] = sum_ref[...] - corr * b1
            sumsq_ref[...] = sumsq_ref[...] - corr * b1 * b1


def _bn_relu_fc2_kernel(h_ref, sum_ref, sumsq_ref, gamma_ref, beta_ref,
                        w2_ref, b2_ref, o_ref, *, batch):
    # Finalize BN stats: tiny [1, H] vector math recomputed per tile so the
    # batch axis carries no state and can stay "parallel" (megacore on v7x).
    inv_b = jnp.float32(1.0 / batch)
    mean = sum_ref[...] * inv_b
    # TODO(synk): E[h^2] - mean^2 in f32 can lose precision for very large
    # batches / activation scales; switch to centered accumulation if needed.
    var = jnp.maximum(sumsq_ref[...] * inv_b - mean * mean, 0.0)
    rstd = jax.lax.rsqrt(var + jnp.float32(BN_EPS))
    scale = gamma_ref[...] * rstd
    shift = beta_ref[...] - mean * scale

    h = h_ref[...].astype(jnp.float32) * scale + shift   # BatchNorm1d (training)
    h = jnp.maximum(h, 0.0)                               # ReLU
    o_ref[...] = (jnp.dot(h.astype(jnp.bfloat16), w2_ref[...],
                          preferred_element_type=jnp.float32)
                  + b2_ref[...]).astype(o_ref.dtype)


def mlp_forward(x, w1, b1, gamma, beta, w2, b2):
    """x: [B, In]; w1: [In, H]; b1/gamma/beta: [1, H]; w2: [H, P]; b2: [1, P]."""
    B, In = x.shape
    H = w1.shape[1]
    P = w2.shape[1]

    In_p = _round_up(In, LANE)
    H_p = _round_up(H, LANE)
    P_p = _round_up(P, LANE)

    # Largest batch tile that keeps both passes inside the VMEM budget: bigger
    # tiles amortize the ~0.35 us per-grid-step overhead and keep DMAs dense.
    tile_b = 512
    while tile_b > 8 and _vmem_needed(tile_b, In_p, H_p, P_p) > _VMEM_BUDGET:
        tile_b //= 2
    tile_b = min(tile_b, _round_up(B, 8))
    B_p = _round_up(B, tile_b)
    nb = B_p // tile_b
    pad_rows = B_p - B

    vmem_limit = int(min(max(2 * _vmem_needed(tile_b, In_p, H_p, P_p),
                             32 * _MiB), 48 * _MiB))

    f32, bf16 = jnp.float32, jnp.bfloat16
    # bf16 matmul operands (MXU native peak on v5e/v6e/v7x, half the HBM/VMEM
    # traffic); BN statistics and all accumulation stay in f32.
    xp = _pad_cast(x, (B_p, In_p), bf16)
    w1p = _pad_cast(w1, (In_p, H_p), bf16)
    w2p = _pad_cast(w2, (H_p, P_p), bf16)
    b1p = _pad_cast(b1, (1, H_p), f32)
    gp = _pad_cast(gamma, (1, H_p), f32)
    btp = _pad_cast(beta, (1, H_p), f32)
    b2p = _pad_cast(b2, (1, P_p), f32)

    const = lambda i: (0, 0)   # weights / vectors resident across the grid

    # ---- Pass 1: fc1 + global BN batch statistics ---------------------------
    k1 = functools.partial(_fc1_stats_kernel, pad_rows=pad_rows)
    h, hsum, hsumsq = pl.pallas_call(
        k1,
        out_shape=(
            jax.ShapeDtypeStruct((B_p, H_p), bf16),   # h intermediate
            jax.ShapeDtypeStruct((1, H_p), f32),      # sum(h, axis=0)
            jax.ShapeDtypeStruct((1, H_p), f32),      # sum(h*h, axis=0)
        ),
        grid_spec=pltpu.PrefetchScalarGridSpec(
            num_scalar_prefetch=0,
            grid=(nb,),
            in_specs=[
                pl.BlockSpec((tile_b, In_p), lambda i: (i, 0)),  # x (streamed)
                pl.BlockSpec((In_p, H_p), const),                # w1 (resident)
                pl.BlockSpec((1, H_p), const),                   # b1 (resident)
            ],
            out_specs=[
                pl.BlockSpec((tile_b, H_p), lambda i: (i, 0)),   # h (streamed)
                pl.BlockSpec((1, H_p), const),                   # sum (accum)
                pl.BlockSpec((1, H_p), const),                   # sumsq (accum)
            ],
        ),
        compiler_params=pltpu.CompilerParams(
            # sum/sumsq are carried across batch tiles -> keep the axis serial.
            dimension_semantics=("arbitrary",),
            vmem_limit_bytes=vmem_limit,
        ),
        cost_estimate=pl.CostEstimate(
            flops=2 * B_p * In_p * H_p,
            transcendentals=0,
            bytes_accessed=(2 * B_p * In_p + 2 * In_p * H_p + 2 * B_p * H_p
                            + 12 * H_p),
        ),
    )(xp, w1p, b1p)

    # ---- Pass 2: BN finalize + affine + ReLU + fc2 ---------------------------
    k2 = functools.partial(_bn_relu_fc2_kernel, batch=B)
    out = pl.pallas_call(
        k2,
        out_shape=jax.ShapeDtypeStruct((B_p, P_p), f32),
        grid_spec=pltpu.PrefetchScalarGridSpec(
            num_scalar_prefetch=0,
            grid=(nb,),
            in_specs=[
                pl.BlockSpec((tile_b, H_p), lambda i: (i, 0)),   # h (streamed)
                pl.BlockSpec((1, H_p), const),                   # sum
                pl.BlockSpec((1, H_p), const),                   # sumsq
                pl.BlockSpec((1, H_p), const),                   # gamma
                pl.BlockSpec((1, H_p), const),                   # beta
                pl.BlockSpec((H_p, P_p), const),                 # w2 (resident)
                pl.BlockSpec((1, P_p), const),                   # b2
            ],
            out_specs=pl.BlockSpec((tile_b, P_p), lambda i: (i, 0)),
        ),
        compiler_params=pltpu.CompilerParams(
            # No cross-tile carry -> megacore-shard the batch axis (v7x win).
            dimension_semantics=("parallel",),
            vmem_limit_bytes=vmem_limit,
        ),
        cost_estimate=pl.CostEstimate(
            flops=2 * B_p * H_p * P_p,
            transcendentals=nb * H_p,
            bytes_accessed=(2 * B_p * H_p + 2 * H_p * P_p + 4 * B_p * P_p
                            + 16 * H_p + 8 * P_p),
        ),
    )(h, hsum, hsumsq, gp, btp, w2p, b2p)

    if (B_p, P_p) != (B, P):
        out = out[:B, :P]
    return out


def mlp_reference(x, w1, b1, gamma, beta, w2, b2):
    h = x @ w1 + b1
    mean = jnp.mean(h, axis=0, keepdims=True)
    var = jnp.mean((h - mean) ** 2, axis=0, keepdims=True)
    h = (h - mean) / jnp.sqrt(var + BN_EPS)
    h = h * gamma + beta
    h = jnp.maximum(h, 0.0)
    return h @ w2 + b2


if __name__ == "__main__":
    # Small shapes consistent with MLP(inplace, hidden_size, place).
    B, INPLACE, HIDDEN, PLACE = 8, 32, 32, 16

    key = jax.random.PRNGKey(0)
    kx, kw1, kb1, kw2, kb2 = jax.random.split(key, 5)

    x = jax.random.normal(kx, (B, INPLACE), dtype=jnp.float32)

    # Deterministic parameter init (PyTorch-style uniform ±1/sqrt(fan_in)),
    # stored pre-transposed as [in, out] for the kernel.
    bound1 = 1.0 / (INPLACE ** 0.5)
    w1 = jax.random.uniform(kw1, (INPLACE, HIDDEN), jnp.float32, -bound1, bound1)
    b1 = jax.random.uniform(kb1, (1, HIDDEN), jnp.float32, -bound1, bound1)

    bound2 = 1.0 / (HIDDEN ** 0.5)
    w2 = jax.random.uniform(kw2, (HIDDEN, PLACE), jnp.float32, -bound2, bound2)
    b2 = jax.random.uniform(kb2, (1, PLACE), jnp.float32, -bound2, bound2)

    # BatchNorm1d affine params (PyTorch default init: gamma=1, beta=0).
    gamma = jnp.ones((1, HIDDEN), jnp.float32)
    beta = jnp.zeros((1, HIDDEN), jnp.float32)

    out = mlp_forward(x, w1, b1, gamma, beta, w2, b2)
    out = jax.block_until_ready(out)

    ref = mlp_reference(x, w1, b1, gamma, beta, w2, b2)
    assert out.shape == (B, PLACE)
    assert out.dtype == jnp.float32
    # Tolerance reflects bf16 MXU operands (f32 accumulation, f32 BN math).
    assert jnp.allclose(out, ref, atol=5e-2, rtol=5e-2), "mismatch vs reference"

    print("KERNEL_OK")
</pallas_src>

<mosaic_0001>
module attributes {stable_mosaic.version = 11 : i64} {
  func.func @_fc1_stats_kernel(%arg0: i32, %arg1: memref<8x128xbf16, #tpu.memory_space<vmem>>, %arg2: memref<128x128xbf16, #tpu.memory_space<vmem>>, %arg3: memref<1x128xf32, #tpu.memory_space<vmem>>, %arg4: memref<8x128xbf16, #tpu.memory_space<vmem>>, %arg5: memref<1x128xf32, #tpu.memory_space<vmem>>, %arg6: memref<1x128xf32, #tpu.memory_space<vmem>>) attributes {dimension_semantics = [#tpu.dimension_semantics<arbitrary>], iteration_bounds = array<i64: 1>, scalar_prefetch = 0 : i64, scratch_operands = 0 : i64, tpu.core_type = #tpu.core_type<tc>, window_params = [{transform_indices = @transform_0, window_bounds = array<i64: 8, 128>}, {pipeline_mode = #tpu.pipeline_mode<synchronous>, transform_indices = @transform_1, window_bounds = array<i64: 128, 128>}, {pipeline_mode = #tpu.pipeline_mode<synchronous>, transform_indices = @transform_2, window_bounds = array<i64: 1, 128>}, {transform_indices = @transform_3, window_bounds = array<i64: 8, 128>}, {pipeline_mode = #tpu.pipeline_mode<synchronous>, transform_indices = @transform_4, window_bounds = array<i64: 1, 128>}, {pipeline_mode = #tpu.pipeline_mode<synchronous>, transform_indices = @transform_5, window_bounds = array<i64: 1, 128>}]} {
    %c0_i32 = arith.constant 0 : i32
    %0 = arith.cmpi eq, %arg0, %c0_i32 : i32
    %1 = arith.extui %0 : i1 to i32
    %c0_i32_0 = arith.constant 0 : i32
    %2 = arith.cmpi ne, %1, %c0_i32_0 : i32
    scf.if %2 {
      %cst_18 = arith.constant 0.000000e+00 : f32
      %22 = vector.broadcast %cst_18 : f32 to vector<1x128xf32>
      %c0_19 = arith.constant 0 : index
      %c0_20 = arith.constant 0 : index
      %23 = vector.load %arg5[%c0_19, %c0_20] : memref<1x128xf32, #tpu.memory_space<vmem>>, vector<1x128xf32>
      tpu.vector_store %arg5[%c0_19, %c0_20], %22 {strides = array<i32>} : memref<1x128xf32, #tpu.memory_space<vmem>>, vector<1x128xf32>,
      %cst_21 = arith.constant 0.000000e+00 : f32
      %24 = vector.broadcast %cst_21 : f32 to vector<1x128xf32>
      %c0_22 = arith.constant 0 : index
      %c0_23 = arith.constant 0 : index
      %25 = vector.load %arg6[%c0_22, %c0_23] : memref<1x128xf32, #tpu.memory_space<vmem>>, vector<1x128xf32>
      tpu.vector_store %arg6[%c0_22, %c0_23], %24 {strides = array<i32>} : memref<1x128xf32, #tpu.memory_space<vmem>>, vector<1x128xf32>,
    } else {
    }
    %c0 = arith.constant 0 : index
    %c0_1 = arith.constant 0 : index
    %3 = vector.load %arg1[%c0, %c0_1] : memref<8x128xbf16, #tpu.memory_space<vmem>>, vector<8x128xbf16>
    %c0_2 = arith.constant 0 : index
    %c0_3 = arith.constant 0 : index
    %4 = vector.load %arg2[%c0_2, %c0_3] : memref<128x128xbf16, #tpu.memory_space<vmem>>, vector<128x128xbf16>
    %cst = arith.constant dense<0.000000e+00> : vector<8x128xf32>
    %5 = tpu.matmul %3, %4, %cst {dimension_numbers = #tpu.dot_dimension_numbers<[1], [0], [0], [1], [0, 0, 1, 1], [], []>} : vector<8x128xbf16>, vector<128x128xbf16>, vector<8x128xf32> -> vector<8x128xf32>
    %c0_4 = arith.constant 0 : index
    %c0_5 = arith.constant 0 : index
    %6 = vector.load %arg3[%c0_4, %c0_5] : memref<1x128xf32, #tpu.memory_space<vmem>>, vector<1x128xf32>
    %7 = vector.broadcast %6 : vector<1x128xf32> to vector<8x128xf32>
    %8 = arith.addf %5, %7 : vector<8x128xf32>
    %c0_6 = arith.constant 0 : index
    %c0_7 = arith.constant 0 : index
    %9 = vector.load %arg5[%c0_6, %c0_7] : memref<1x128xf32, #tpu.memory_space<vmem>>, vector<1x128xf32>
    %cst_8 = arith.constant dense<0.000000e+00> : vector<128xf32>
    %10 = vector.multi_reduction <add>, %8, %cst_8 [0] : vector<8x128xf32> to vector<128xf32>
    %11 = vector.shape_cast %10 : vector<128xf32> to vector<1x128xf32>
    %12 = arith.addf %9, %11 : vector<1x128xf32>
    %c0_9 = arith.constant 0 : index
    %c0_10 = arith.constant 0 : index
    %13 = vector.load %arg5[%c0_9, %c0_10] : memref<1x128xf32, #tpu.memory_space<vmem>>, vector<1x128xf32>
    tpu.vector_store %arg5[%c0_9, %c0_10], %12 {strides = array<i32>} : memref<1x128xf32, #tpu.memory_space<vmem>>, vector<1x128xf32>,
    %c0_11 = arith.constant 0 : index
    %c0_12 = arith.constant 0 : index
    %14 = vector.load %arg6[%c0_11, %c0_12] : memref<1x128xf32, #tpu.memory_space<vmem>>, vector<1x128xf32>
    %15 = arith.mulf %8, %8 : vector<8x128xf32>
    %cst_13 = arith.constant dense<0.000000e+00> : vector<128xf32>
    %16 = vector.multi_reduction <add>, %15, %cst_13 [0] : vector<8x128xf32> to vector<128xf32>
    %17 = vector.shape_cast %16 : vector<128xf32> to vector<1x128xf32>
    %18 = arith.addf %14, %17 : vector<1x128xf32>
    %c0_14 = arith.constant 0 : index
    %c0_15 = arith.constant 0 : index
    %19 = vector.load %arg6[%c0_14, %c0_15] : memref<1x128xf32, #tpu.memory_space<vmem>>, vector<1x128xf32>
    tpu.vector_store %arg6[%c0_14, %c0_15], %18 {strides = array<i32>} : memref<1x128xf32, #tpu.memory_space<vmem>>, vector<1x128xf32>,
    %20 = arith.truncf %8 : vector<8x128xf32> to vector<8x128xbf16>
    %c0_16 = arith.constant 0 : index
    %c0_17 = arith.constant 0 : index
    %21 = vector.load %arg4[%c0_16, %c0_17] : memref<8x128xbf16, #tpu.memory_space<vmem>>, vector<8x128xbf16>
    tpu.vector_store %arg4[%c0_16, %c0_17], %20 {strides = array<i32>} : memref<8x128xbf16, #tpu.memory_space<vmem>>, vector<8x128xbf16>,
    return
  }
  func.func @transform_0(%arg0: i32) -> (i32, i32) {
    %c0_i32 = arith.constant 0 : i32
    %c0_i32_0 = arith.constant 0 : i32
    return %arg0, %c0_i32 : i32, i32
  }
  func.func @transform_1(%arg0: i32) -> (i32, i32) {
    %c0_i32 = arith.constant 0 : i32
    %c0_i32_0 = arith.constant 0 : i32
    %c0_i32_1 = arith.constant 0 : i32
    return %c0_i32, %c0_i32_0 : i32, i32
  }
  func.func @transform_2(%arg0: i32) -> (i32, i32) {
    %c0_i32 = arith.constant 0 : i32
    %c0_i32_0 = arith.constant 0 : i32
    %c0_i32_1 = arith.constant 0 : i32
    return %c0_i32, %c0_i32_0 : i32, i32
  }
  func.func @transform_3(%arg0: i32) -> (i32, i32) {
    %c0_i32 = arith.constant 0 : i32
    %c0_i32_0 = arith.constant 0 : i32
    return %arg0, %c0_i32 : i32, i32
  }
  func.func @transform_4(%arg0: i32) -> (i32, i32) {
    %c0_i32 = arith.constant 0 : i32
    %c0_i32_0 = arith.constant 0 : i32
    %c0_i32_1 = arith.constant 0 : i32
    return %c0_i32, %c0_i32_0 : i32, i32
  }
  func.func @transform_5(%arg0: i32) -> (i32, i32) {
    %c0_i32 = arith.constant 0 : i32
    %c0_i32_0 = arith.constant 0 : i32
    %c0_i32_1 = arith.constant 0 : i32
    return %c0_i32, %c0_i32_0 : i32, i32
  }
}

</mosaic_0001>

<bundles_post_ra>
// kernel: tpu_custom_call.1
= control target key start
LH: loop header
LB: loop body
LE: loop exit
PB: predicated region body
PF: predicated region fallthrough
CT: control target
= control target key end

     0   :  { %11 = vsyncpa [#allocation3], 0  ;;  %s518_s0 = inlined_call_operand.hbm [shape: bf16[8,128], index: 0, kind: input, shape index: {}]   ;;  %s519_s1 = inlined_call_operand.hbm [shape: bf16[128,128], index: 1, kind: input, shape index: {}]   ;;  %s520_s2 = inlined_call_operand.vmem [shape: f32[1,128], index: 2, kind: input, shape index: {}]   ;;  %s521_s3 = inlined_call_operand.hbm [shape: bf16[8,128], index: 3, kind: output, shape index: {0}]   ;;  %s522_s4 = inlined_call_operand.hbm [shape: f32[1,128], index: 4, kind: output, shape index: {1}]   ;;  %s523_s5 = inlined_call_operand.hbm [shape: f32[1,128], index: 5, kind: output, shape index: {2}]  }
   0x1   :  { %12 = vsyncpa [#allocation6], 0 }
   0x2   :  { %13 = vsyncpa [#allocation4], 0 }
   0x3   :  { %14 = vsyncpa [#allocation9], 0  ;;  %s401_s18 = smov [#allocation2]   ;;  %s402_s20 = smov [#allocation5]  }
   0x4   :  { %s21_s19 = sshll.u32 %s401_s18, 4  ;;  %s30_s21 = sshll.u32 %s402_s20, 4  ;;  %s22_s19 = int_to_ptr.vmem [resolvable:$true] %s21_s19  ;;  %s440_s21 = int_to_ptr.vmem [resolvable:$true] %s30_s21 }
   0x5   :  { %s283_s24 = scalar_lea.hbm %s518_s0, 64 }
   0x6   :  { %p284_p0 = scmp.ne.s32.totalorder %s518_s0, %s283_s24  ;;  %p287_p1 = scmp.lt.u32.totalorder %s283_s24, %s518_s0 }
   0x8   :  { %p289_p2 = pnand %p287_p1, %p284_p0 }
   0xa   :  { %292 = shalt.err (!%p289_p2)
}
   0xb   :  { %s293_s29 = scalar_lea.vmem %s22_s19, 64  ;;  %p298_p4 = scmp.lt.s32.totalorder %s22_s19, %s22_s19 }
   0xc   :  { %p294_p3 = scmp.ne.s32.totalorder %s22_s19, %s293_s29  ;;  %p299_p5 = scmp.lt.s32.totalorder %s293_s29, %s293_s29 }
   0xe   :  { %p300_p6 = por %p299_p5, %p298_p4 }
  0x10   :  { %p301_p7 = pnand %p300_p6, %p294_p3 }
  0x12   :  { %304 = shalt.err (!%p301_p7)
}
  0x13   :  { %24 = dma.hbm_to_vmem [thread:$0]  %s518_s0, 64, %s22_s19, [#allocation3]  }
  0x14   :  { %s305_s9 = scalar_lea.hbm %s519_s1, 1024 }
  0x15   :  { %p306_p8 = scmp.ne.s32.totalorder %s519_s1, %s305_s9  ;;  %p309_p9 = scmp.lt.u32.totalorder %s305_s9, %s519_s1 }
  0x17   :  { %p311_p10 = pnand %p309_p9, %p306_p8 }
  0x19   :  { %314 = shalt.err (!%p311_p10)
}
  0x1a   :  { %s315_s14 = scalar_lea.vmem %s440_s21, 1024  ;;  %p320_p12 = scmp.lt.s32.totalorder %s440_s21, %s440_s21 }
  0x1b   :  { %p316_p11 = scmp.ne.s32.totalorder %s440_s21, %s315_s14  ;;  %p321_p13 = scmp.lt.s32.totalorder %s315_s14, %s315_s14 }
  0x1d   :  { %p322_p0 = por %p321_p13, %p320_p12 }
  0x1f   :  { %p323_p1 = pnand %p322_p0, %p316_p11 }
  0x21   :  { %326 = shalt.err (!%p323_p1)
}
  0x22   :  { %s403_s0 = smov 64   ;;  %s404_s15 = smov 4  }
  0x23   :  { %36 = dma.hbm_to_vmem [thread:$0]  %s519_s1, 1024, %s440_s21, [#allocation6], %s403_s0, %s403_s0, %s404_s15  }
  0x24   :  { %393 = dma.done.wait [#allocation3], 64  }
  0x25   :  { %394 = vsyncadd [#allocation3], 4294967232 }
  0x26   :  { %395 = dma.done.wait [#allocation6], 1024  }
  0x27   :  { %396 = vsyncadd [#allocation6], 4294966272  ;;  %v405_v0 = vmov 0.0   ;;  %vm406_vm0 = vmmov 0   ;;  %v275_v1 = vld [vmem:[#allocation5] sm:$0xff]   ;;  %v276_v2 = vld [vmem:[#allocation5 + $0x8] sm:$0xff]  }
  0x28   :  { %246 = vmatprep.subr.bf16.mxu0 %v405_v0  ;;  %50 = vst [vmem:[#allocation8] sm:$0x1] %v405_v0  ;;  %51 = vst [vmem:[#allocation10] sm:$0x1] %v405_v0  ;;  %262 = vmatprep.mubr.msk.bf16.mxu0 %vm406_vm0, %v405_v0  ;;  %v277_v3 = vld [vmem:[#allocation5 + $0x10] sm:$0xff]   ;;  %v278_v4 = vld [vmem:[#allocation5 + $0x18] sm:$0xff]  }
  0x29   :  { %247 = vmatpush3.bf16.msra.mxu0 %v275_v1  ;;  %v279_v5 = vld [vmem:[#allocation5 + $0x20] sm:$0xff]   ;;  %v280_v6 = vld [vmem:[#allocation5 + $0x28] sm:$0xff]   ;;  %v281_v7 = vld [vmem:[#allocation5 + $0x30] sm:$0xff]   ;;  %s407_s19 = smov [#allocation7]  }
  0x2a   :  { %248 = vmatprep.subr.bf16.mxu0 %v405_v0  ;;  %v282_v8 = vld [vmem:[#allocation5 + $0x38] sm:$0xff]   ;;  %s191_s20 = sshll.u32 %s407_s19, 4  ;;  %s192_s20 = int_to_ptr.vmem [resolvable:$true] %s191_s20 }
  0x2b   :  { %v52_v9 = vld [vmem:[#allocation2] sm:$0xf]  ;;  %s327_s21 = scalar_lea.vmem %s192_s20, 64  ;;  %p332_p3 = scmp.lt.s32.totalorder %s192_s20, %s192_s20 }
  0x2c   :  { %v228_v10 = vld [vmem:[%s520_s2] ss:$0 sm:$0xff]  ;;  %p328_p2 = scmp.ne.s32.totalorder %s192_s20, %s327_s21  ;;  %p333_p4 = scmp.lt.s32.totalorder %s327_s21, %s327_s21 }
  0x2d   :  { %249 = vmatpush3.bf16.msra.mxu0 %v276_v2 }
  0x2e   :  { %250 = vmatprep.subr.bf16.mxu0 %v405_v0  ;;  %p334_p5 = por %p333_p4, %p332_p3 }
  0x30   :  { %p335_p6 = pnand %p334_p5, %p328_p2 }
  0x31   :  { %251 = vmatpush3.bf16.msra.mxu0 %v277_v3 }
  0x32   :  { %252 = vmatprep.subr.bf16.mxu0 %v405_v0 }
  0x35   :  { %253 = vmatpush3.bf16.msra.mxu0 %v278_v4 }
  0x36   :  { %254 = vmatprep.subr.bf16.mxu0 %v405_v0 }
  0x39   :  { %255 = vmatpush3.bf16.msra.mxu0 %v279_v5 }
  0x3a   :  { %256 = vmatprep.subr.bf16.mxu0 %v405_v0 }
  0x3d   :  { %257 = vmatpush3.bf16.msra.mxu0 %v280_v6 }
  0x3e   :  { %258 = vmatprep.subr.bf16.mxu0 %v405_v0 }
  0x41   :  { %259 = vmatpush3.bf16.msra.mxu0 %v281_v7 }
  0x42   :  { %260 = vmatprep.subr.bf16.mxu0 %v405_v0 }
  0x45   :  { %261 = vmatpush3.bf16.msra.mxu0 %v282_v8 }
  0x48   :  { %263 = vmatmul.mubr.bf16.vlgmr.msra.gmra.mrb[0].mxu0 %v52_v9 }
 0x11b   :  { %v158_v11 = vpop.f32.mrb[0].mxu0 }
 0x11c   :  { %v159_v12 = vadd.f32 %v228_v10, %v158_v11  ;;  %v264_v13 = vpop.f32.mrb[1].mxu0 }
 0x11d   :  { %v161_v14 = vpop.f32.mrb[2].mxu0 }
 0x11e   :  { %v165_v15 = vrot.slane %v159_v12, 4  ;;  %v174_v16 = vmul.f32 %v159_v12, %v159_v12  ;;  %v265_v17 = vpop.f32.mrb[3].mxu0  ;;  %v183_v18 = vpack.c.bf16 %v159_v12, %v159_v12 }
 0x120   :  { %v166_v19 = vadd.f32 %v165_v15, %v159_v12  ;;  %v175_v20 = vrot.slane %v174_v16, 4  ;;  %184 = vst [vmem:[#allocation7] sm:$0xf] %v183_v18 }
 0x121   :  { %338 = shalt.err (!%p335_p6)
}
 0x122   :  { %s339_s23 = scalar_lea.hbm %s521_s3, 64 }
 0x123   :  { %p340_p7 = scmp.ne.s32.totalorder %s521_s3, %s339_s23  ;;  %p343_p8 = scmp.lt.u32.totalorder %s339_s23, %s521_s3 }
 0x125   :  { %p345_p9 = pnand %p343_p8, %p340_p7 }
 0x127   :  { %348 = shalt.err (!%p345_p9)
}
 0x128   :  { %194 = dma.vmem_to_hbm [thread:$0]  %s192_s20, 64, %s521_s3, [#allocation4]   ;;  %v167_v21 = vrot.slane %v166_v19, 2  ;;  %v176_v22 = vadd.f32 %v175_v20, %v174_v16  ;;  %v164_v27 = vld [vmem:[#allocation8] sm:$0x1] }
 0x129   :  { %s408_s30 = smov [#allocation8]   ;;  %v173_v30 = vld [vmem:[#allocation10] sm:$0x1]  ;;  %s409_s7 = smov [#allocation10]  }
 0x12a   :  { %v168_v23 = vadd.f32 %v167_v21, %v166_v19  ;;  %v177_v24 = vrot.slane %v176_v22, 2  ;;  %s201_s6 = sshll.u32 %s408_s30, 4  ;;  %s211_s8 = sshll.u32 %s409_s7, 4  ;;  %s202_s6 = int_to_ptr.vmem [resolvable:$true] %s201_s6  ;;  %s486_s8 = int_to_ptr.vmem [resolvable:$true] %s211_s8 }
 0x12b   :  { %s349_s3 = scalar_lea.vmem %s202_s6, 16  ;;  %s353_s9 = scalar_lea.vmem %s202_s6, 32 }
 0x12c   :  { %v169_v25 = vrot.slane %v168_v23, 1  ;;  %v178_v26 = vadd.f32 %v177_v24, %v176_v22  ;;  %p350_p10 = scmp.ne.s32.totalorder %s202_s6, %s349_s3  ;;  %p354_p11 = scmp.lt.s32.totalorder %s202_s6, %s202_s6 }
 0x12d   :  { %p355_p12 = scmp.lt.s32.totalorder %s353_s9, %s349_s3 }
 0x12e   :  { %v170_v28 = vadd.f32 %v169_v25, %v168_v23  ;;  %v179_v29 = vrot.slane %v178_v26, 1 }
 0x12f   :  { %p356_p13 = por %p355_p12, %p354_p11 }
 0x130   :  { %v171_v31 = vadd.f32 %v170_v28, %v164_v27  ;;  %v180_v32 = vadd.f32 %v179_v29, %v178_v26 }
 0x131   :  { %p357_p0 = pnand %p356_p13, %p350_p10 }
 0x132   :  { %172 = vst [vmem:[#allocation8] sm:$0x1] %v171_v31  ;;  %v181_v33 = vadd.f32 %v180_v32, %v173_v30 }
 0x133   :  { %360 = shalt.err (!%p357_p0)
}
 0x134   :  { %s361_s12 = scalar_lea.hbm %s522_s4, 16 }
 0x135   :  { %p362_p1 = scmp.ne.s32.totalorder %s522_s4, %s361_s12  ;;  %p365_p2 = scmp.lt.u32.totalorder %s361_s12, %s522_s4 }
 0x137   :  { %p367_p3 = pnand %p365_p2, %p362_p1 }
 0x139   :  { %370 = shalt.err (!%p367_p3)
}
 0x13a   :  { %204 = dma.vmem_to_hbm [thread:$0]  %s202_s6, 16, %s522_s4, [#allocation9]   ;;  %182 = vst [vmem:[#allocation10] sm:$0x1] %v181_v33 }
 0x13b   :  { %s371_s1 = scalar_lea.vmem %s486_s8, 16  ;;  %s375_s18 = scalar_lea.vmem %s486_s8, 32 }
 0x13c   :  { %p372_p4 = scmp.ne.s32.totalorder %s486_s8, %s371_s1  ;;  %p376_p5 = scmp.lt.s32.totalorder %s486_s8, %s486_s8 }
 0x13d   :  { %p377_p6 = scmp.lt.s32.totalorder %s375_s18, %s371_s1 }
 0x13f   :  { %p378_p7 = por %p377_p6, %p376_p5 }
 0x141   :  { %p379_p8 = pnand %p378_p7, %p372_p4 }
 0x143   :  { %382 = shalt.err (!%p379_p8)
}
 0x144   :  { %s383_s21 = scalar_lea.hbm %s523_s5, 16 }
 0x145   :  { %p384_p9 = scmp.ne.s32.totalorder %s523_s5, %s383_s21  ;;  %p387_p10 = scmp.lt.u32.totalorder %s383_s21, %s523_s5 }
 0x147   :  { %p389_p11 = pnand %p387_p10, %p384_p9 }
 0x149   :  { %392 = shalt.err (!%p389_p11)
}
 0x14a   :  { %214 = dma.vmem_to_hbm [thread:$0]  %s486_s8, 16, %s523_s5, [#allocation9]  }
 0x14b   :  { %397 = dma.done.wait [#allocation4], 64  }
 0x14c   :  { %398 = vsyncadd [#allocation4], 4294967232 }
 0x14d   :  { %399 = dma.done.wait [#allocation9], 32  }
 0x14e   :  { %400 = vsyncadd [#allocation9], 4294967264 }
 0x14f   :  { %224 = vsyncpa [#allocation3], 1 }
 0x150   :  { %225 = vsyncpa [#allocation6], 1 }
 0x151   :  { %226 = vsyncpa [#allocation4], 1 }
 0x152   :  { %227 = vsyncpa [#allocation9], 1 }

</bundles_post_ra>
